<compile_context>
chip_gen: v7x
topology: tpu7x:2x2x1
jax: 0.10.0
libtpu: 0.0.40
codegen_flags: <defaults>
</compile_context>

<pallas_src>
import functools

import jax
import jax.numpy as jnp
from jax.experimental import pallas as pl
from jax.experimental.pallas import tpu as pltpu


def _round_up(x: int, m: int) -> int:
    return pl.cdiv(x, m) * m


def _choose_tile(dim: int, max_tile: int, align: int) -> int:
    """Near-divisor tile selection.

    - dim <= max_tile: use the full extent (a block equal to the full array
      dim needs no (8,128) alignment and no padding).
    - else: the smallest `align`-aligned tile that covers `dim` in
      ceil(dim / max_tile) blocks, bounding padding to < align per block.
    """
    if dim <= max_tile:
        return dim
    n_blocks = pl.cdiv(dim, max_tile)
    return _round_up(pl.cdiv(dim, n_blocks), align)


def _matmul_kernel_bf16x3(a_ref, b_ref, o_ref):
    """One (tm, tn) output tile, reduced over the innermost K grid axis.

    The output BlockSpec's index map (i, j) is k-invariant and the k axis is
    marked "arbitrary", so the f32 output tile stays resident in VMEM across
    the whole reduction and we accumulate directly into it (no scratch, no
    final copy).  Do NOT change the out index map / k semantics without
    revisiting this accumulation.
    """
    @pl.when(pl.program_id(2) == 0)
    def _():
        o_ref[...] = jnp.zeros_like(o_ref)

    a = a_ref[...]
    b = b_ref[...]
    # Split each f32 operand into bf16 hi + bf16 residual lo (a ~= hi + lo
    # with ~16 mantissa bits of effective precision).
    a_hi = a.astype(jnp.bfloat16)
    b_hi = b.astype(jnp.bfloat16)
    a_lo = (a - a_hi.astype(jnp.float32)).astype(jnp.bfloat16)
    b_lo = (b - b_hi.astype(jnp.float32)).astype(jnp.bfloat16)

    # 3 bf16 MXU passes with f32 accumulation; the dropped lo*lo term is
    # O(2^-18) relative -- negligible vs. the 1e-3 accuracy budget.
    acc = jnp.dot(a_hi, b_hi, preferred_element_type=jnp.float32)
    acc += jnp.dot(a_lo, b_hi, preferred_element_type=jnp.float32)
    acc += jnp.dot(a_hi, b_lo, preferred_element_type=jnp.float32)
    o_ref[...] += acc


def _matmul_kernel_f32(a_ref, b_ref, o_ref):
    """Strict f32 fallback (same K-resident accumulation scheme)."""
    @pl.when(pl.program_id(2) == 0)
    def _():
        o_ref[...] = jnp.zeros_like(o_ref)

    o_ref[...] += jnp.dot(
        a_ref[...], b_ref[...], preferred_element_type=jnp.float32
    )


@functools.partial(jax.jit, static_argnames=("tm", "tn", "tk", "use_bf16x3"))
def matmul(a: jax.Array, b: jax.Array, *, tm: int = 1024, tn: int = 1024,
           tk: int = 512, use_bf16x3: bool = True) -> jax.Array:
    """C = A @ B (float32), tiled Pallas TPU kernel.

    Defaults tm=tn=1024, tk=512 -> ~16 MiB double-buffered VMEM, 256-aligned
    tiles, fits all of v5e / v6e / v7x and keeps the kernel MXU-bound.
    """
    assert a.ndim == 2 and b.ndim == 2 and a.shape[1] == b.shape[0], (
        a.shape, b.shape)
    M, K = a.shape
    _, N = b.shape
    a = a.astype(jnp.float32)
    b = b.astype(jnp.float32)

    # Tile alignment requirements (when the tile != full dim):
    #   A block (tm, tk): tm % 8, tk % 128
    #   B block (tk, tn): tk % 8, tn % 128
    #   C block (tm, tn): tm % 8, tn % 128
    tm = _choose_tile(M, tm, 8)
    tn = _choose_tile(N, tn, 128)
    tk = _choose_tile(K, tk, 128)

    # v7x has 2 TensorCores and the (i, j) axes are "parallel" (sharded across
    # them).  If the output collapses to a single tile, split one dimension --
    # but only when the split is essentially free (no meaningful pad waste),
    # so single-TC chips (v5e/v6e) are not penalized.
    if pl.cdiv(M, tm) * pl.cdiv(N, tn) < 2:
        if N >= 256 and N % 256 == 0:
            tn = N // 2                       # exact split, 128-aligned
        elif M >= 256:
            tm = _round_up(pl.cdiv(M, 2), 8)  # pads at most 7 rows

    # Pad only the small remainder left by the near-divisor tiles (zero rows /
    # columns do not change the matmul result).  For aligned shapes this is a
    # no-op and no HBM copies are made.
    Mp, Kp, Np = _round_up(M, tm), _round_up(K, tk), _round_up(N, tn)
    a_p = a if (Mp == M and Kp == K) else jnp.pad(a, ((0, Mp - M), (0, Kp - K)))
    b_p = b if (Kp == K and Np == N) else jnp.pad(b, ((0, Kp - K), (0, Np - N)))

    kernel = _matmul_kernel_bf16x3 if use_bf16x3 else _matmul_kernel_f32

    out = pl.pallas_call(
        kernel,
        out_shape=jax.ShapeDtypeStruct((Mp, Np), jnp.float32),
        grid_spec=pltpu.PrefetchScalarGridSpec(
            num_scalar_prefetch=0,
            grid=(Mp // tm, Np // tn, Kp // tk),
            in_specs=[
                pl.BlockSpec((tm, tk), lambda i, j, k: (i, k)),
                pl.BlockSpec((tk, tn), lambda i, j, k: (k, j)),
            ],
            # NOTE: must stay k-invariant (K-resident accumulator) and the k
            # grid axis must stay "arbitrary" for the accumulation to be valid.
            out_specs=pl.BlockSpec((tm, tn), lambda i, j, k: (i, j)),
        ),
        compiler_params=pltpu.CompilerParams(
            dimension_semantics=("parallel", "parallel", "arbitrary"),
            vmem_limit_bytes=48 * 1024 * 1024,
        ),
        cost_estimate=pl.CostEstimate(
            flops=2 * M * N * K,
            transcendentals=0,
            bytes_accessed=(M * K + K * N + M * N) * 4,
        ),
    )(a_p, b_p)

    if Mp != M or Np != N:
        out = out[:M, :N]
    return out


if __name__ == "__main__":
    key = jax.random.PRNGKey(0)
    k1, k2, k3, k4, k5, k6 = jax.random.split(key, 6)

    # Case 1: tiny, non-tile-aligned -> tiles clamp to full dims, no padding.
    A1 = jax.random.normal(k1, (64, 96), dtype=jnp.float32)
    B1 = jax.random.normal(k2, (96, 48), dtype=jnp.float32)
    C1 = matmul(A1, B1)

    # Case 2: multi-block grid with a multi-step K reduction (small explicit
    # tiles to exercise the K-resident accumulation across k steps).
    A2 = jax.random.normal(k3, (256, 384), dtype=jnp.float32)
    B2 = jax.random.normal(k4, (384, 256), dtype=jnp.float32)
    C2 = matmul(A2, B2, tm=128, tn=128, tk=128)

    # Case 3: dims larger than their tiles and not multiples -> near-divisor
    # tiles plus a small zero pad.
    A3 = jax.random.normal(k5, (200, 200), dtype=jnp.float32)
    B3 = jax.random.normal(k6, (200, 136), dtype=jnp.float32)
    C3 = matmul(A3, B3, tm=64, tn=128, tk=128)

    # Case 4: strict-f32 fallback path (also exercises the 2-tile split).
    C4 = matmul(A2, B2, use_bf16x3=False)

    jax.block_until_ready((C1, C2, C3, C4))

    for got, (a, b) in ((C1, (A1, B1)), (C2, (A2, B2)),
                        (C3, (A3, B3)), (C4, (A2, B2))):
        ref = jnp.dot(a, b, precision=jax.lax.Precision.HIGHEST)
        assert jnp.allclose(got, ref, atol=1e-3, rtol=1e-3), "mismatch vs reference"

    print("KERNEL_OK")
</pallas_src>

<mosaic_0001>
module attributes {stable_mosaic.version = 11 : i64} {
  func.func @_matmul_kernel_bf16x3(%arg0: i32, %arg1: i32, %arg2: i32, %arg3: memref<64x96xf32, #tpu.memory_space<vmem>>, %arg4: memref<96x48xf32, #tpu.memory_space<vmem>>, %arg5: memref<64x48xf32, #tpu.memory_space<vmem>>) attributes {dimension_semantics = [#tpu.dimension_semantics<parallel>, #tpu.dimension_semantics<parallel>, #tpu.dimension_semantics<arbitrary>], iteration_bounds = array<i64: 1, 1, 1>, scalar_prefetch = 0 : i64, scratch_operands = 0 : i64, tpu.core_type = #tpu.core_type<tc>, window_params = [{transform_indices = @transform_0, window_bounds = array<i64: 64, 96>}, {transform_indices = @transform_1, window_bounds = array<i64: 96, 48>}, {transform_indices = @transform_2, window_bounds = array<i64: 64, 48>}]} {
    %c0_i32 = arith.constant 0 : i32
    %0 = arith.cmpi eq, %arg2, %c0_i32 : i32
    %1 = arith.extui %0 : i1 to i32
    %c0_i32_0 = arith.constant 0 : i32
    %2 = arith.cmpi ne, %1, %c0_i32_0 : i32
    scf.if %2 {
      %cst_10 = arith.constant 0.000000e+00 : f32
      %21 = vector.broadcast %cst_10 : f32 to vector<64x48xf32>
      %c0_11 = arith.constant 0 : index
      %c0_12 = arith.constant 0 : index
      %22 = vector.load %arg5[%c0_11, %c0_12] : memref<64x48xf32, #tpu.memory_space<vmem>>, vector<64x48xf32>
      tpu.vector_store %arg5[%c0_11, %c0_12], %21 {strides = array<i32>} : memref<64x48xf32, #tpu.memory_space<vmem>>, vector<64x48xf32>,
    } else {
    }
    %c0 = arith.constant 0 : index
    %c0_1 = arith.constant 0 : index
    %3 = vector.load %arg3[%c0, %c0_1] : memref<64x96xf32, #tpu.memory_space<vmem>>, vector<64x96xf32>
    %c0_2 = arith.constant 0 : index
    %c0_3 = arith.constant 0 : index
    %4 = vector.load %arg4[%c0_2, %c0_3] : memref<96x48xf32, #tpu.memory_space<vmem>>, vector<96x48xf32>
    %5 = arith.truncf %3 : vector<64x96xf32> to vector<64x96xbf16>
    %6 = arith.truncf %4 : vector<96x48xf32> to vector<96x48xbf16>
    %7 = arith.extf %5 : vector<64x96xbf16> to vector<64x96xf32>
    %8 = arith.subf %3, %7 : vector<64x96xf32>
    %9 = arith.truncf %8 : vector<64x96xf32> to vector<64x96xbf16>
    %10 = arith.extf %6 : vector<96x48xbf16> to vector<96x48xf32>
    %11 = arith.subf %4, %10 : vector<96x48xf32>
    %12 = arith.truncf %11 : vector<96x48xf32> to vector<96x48xbf16>
    %cst = arith.constant dense<0.000000e+00> : vector<64x48xf32>
    %13 = tpu.matmul %5, %6, %cst {dimension_numbers = #tpu.dot_dimension_numbers<[1], [0], [0], [1], [0, 0, 1, 1], [], []>} : vector<64x96xbf16>, vector<96x48xbf16>, vector<64x48xf32> -> vector<64x48xf32>
    %cst_4 = arith.constant dense<0.000000e+00> : vector<64x48xf32>
    %14 = tpu.matmul %9, %6, %cst_4 {dimension_numbers = #tpu.dot_dimension_numbers<[1], [0], [0], [1], [0, 0, 1, 1], [], []>} : vector<64x96xbf16>, vector<96x48xbf16>, vector<64x48xf32> -> vector<64x48xf32>
    %15 = arith.addf %13, %14 : vector<64x48xf32>
    %cst_5 = arith.constant dense<0.000000e+00> : vector<64x48xf32>
    %16 = tpu.matmul %5, %12, %cst_5 {dimension_numbers = #tpu.dot_dimension_numbers<[1], [0], [0], [1], [0, 0, 1, 1], [], []>} : vector<64x96xbf16>, vector<96x48xbf16>, vector<64x48xf32> -> vector<64x48xf32>
    %17 = arith.addf %15, %16 : vector<64x48xf32>
    %c0_6 = arith.constant 0 : index
    %c0_7 = arith.constant 0 : index
    %18 = vector.load %arg5[%c0_6, %c0_7] : memref<64x48xf32, #tpu.memory_space<vmem>>, vector<64x48xf32>
    %19 = arith.addf %18, %17 : vector<64x48xf32>
    %c0_8 = arith.constant 0 : index
    %c0_9 = arith.constant 0 : index
    %20 = vector.load %arg5[%c0_8, %c0_9] : memref<64x48xf32, #tpu.memory_space<vmem>>, vector<64x48xf32>
    tpu.vector_store %arg5[%c0_8, %c0_9], %19 {strides = array<i32>} : memref<64x48xf32, #tpu.memory_space<vmem>>, vector<64x48xf32>,
    return
  }
  func.func @transform_0(%arg0: i32, %arg1: i32, %arg2: i32) -> (i32, i32) {
    %c0_i32 = arith.constant 0 : i32
    return %arg0, %arg2 : i32, i32
  }
  func.func @transform_1(%arg0: i32, %arg1: i32, %arg2: i32) -> (i32, i32) {
    %c0_i32 = arith.constant 0 : i32
    return %arg2, %arg1 : i32, i32
  }
  func.func @transform_2(%arg0: i32, %arg1: i32, %arg2: i32) -> (i32, i32) {
    %c0_i32 = arith.constant 0 : i32
    return %arg0, %arg1 : i32, i32
  }
}

</mosaic_0001>

<bundles_post_ra>
// kernel: matmul.1
= control target key start
LH: loop header
LB: loop body
LE: loop exit
PB: predicated region body
PF: predicated region fallthrough
CT: control target
= control target key end

     0   :  { %vm105_vm0 = vcmask 785408   ;;  %vm16_vm1 = vcmask 392192   ;;  %s773_s1 = inlined_call_operand.vmem [shape: f32[96,48], index: 1, kind: input, shape index: {}]   ;;  %s774_s0 = inlined_call_operand.vmem [shape: f32[64,96], index: 0, kind: input, shape index: {}]   ;;  %s775_s2 = inlined_call_operand.vmem [shape: f32[64,48], index: 2, kind: output, shape index: {}]  }
   0x1   :  { %v33_v0 = vld [vmem:[%s773_s1] sm:$0xff]  ;;  %v34_v1 = vld [vmem:[%s773_s1 + $0x8] sm:$0xff]  ;;  %v518_v2 = vld [vmem:[%s773_s1 + $0x10] sm:$0xff] }
   0x2   :  { %v49_v3 = vpack.c.bf16 %v34_v1, %v33_v0  ;;  %v523_v4 = vld [vmem:[%s773_s1 + $0x18] sm:$0xff]  ;;  %v532_v6 = vld [vmem:[%s773_s1 + $0x20] sm:$0xff]  ;;  %v537_v7 = vld [vmem:[%s773_s1 + $0x28] sm:$0xff] }
   0x3   :  { %v527_v5 = vpack.c.bf16 %v523_v4, %v518_v2  ;;  %v25_v8 = vld [vmem:[%s774_s0] sm:$0xff]  ;;  %v26_v9 = vld [vmem:[%s774_s0 + $0x8] sm:$0xff]  ;;  %v549_v10 = vpack.c.bf16 %v537_v7, %v532_v6  ;;  %v556_v12 = vld [vmem:[%s773_s1 + $0x30] sm:$0xff] }
   0x4   :  { %404 = vmatprep.subr.bf16.mxu1 %v49_v3  ;;  %424 = vmatprep.subr.bf16.mxu0 %v49_v3  ;;  %v551_v11 = vpack.c.bf16 %v26_v9, %v25_v8  ;;  %v561_v13 = vld [vmem:[%s773_s1 + $0x38] sm:$0xff]  ;;  %v27_v16 = vld [vmem:[%s774_s0 + $0x10] sm:$0xff]  ;;  %v584_v21 = vld [vmem:[%s773_s1 + $0x40] sm:$0xff]  ;;  %v75_v30 = vunpack.c.l.bf16 %v49_v3  ;;  %v76_v31 = vunpack.c.h.bf16 %v49_v3 }
   0x5   :  { %405 = vmatpush3.bf16.msra.mxu1 %v49_v3  ;;  %425 = vmatpush3.bf16.msra.mxu0 %v49_v3  ;;  %v28_v17 = vld [vmem:[%s774_s0 + $0x18] sm:$0xff]  ;;  %v579_v18 = vpack.c.bf16 %v561_v13, %v556_v12  ;;  %v589_v22 = vld [vmem:[%s773_s1 + $0x48] sm:$0xff]  ;;  %v29_v25 = vld [vmem:[%s774_s0 + $0x20] sm:$0xff]  ;;  %v77_v40 = vunpack.c.l.bf16 %v527_v5  ;;  %v78_v41 = vunpack.c.h.bf16 %v527_v5  ;;  %v79_v47 = vunpack.c.l.bf16 %v549_v10 }
   0x6   :  { %406 = vmatprep.subr.bf16.mxu1 %v527_v5  ;;  %426 = vmatprep.subr.bf16.mxu0 %v527_v5  ;;  %v55_v14 = vunpack.c.l.bf16 %v551_v11  ;;  %v56_v15 = vunpack.c.h.bf16 %v551_v11  ;;  %v591_v24 = vpack.c.bf16 %v28_v17, %v27_v16  ;;  %v30_v26 = vld [vmem:[%s774_s0 + $0x28] sm:$0xff]  ;;  %v605_v27 = vpack.c.bf16 %v589_v22, %v584_v21  ;;  %v610_v28 = vld [vmem:[%s773_s1 + $0x50] sm:$0xff]  ;;  %v615_v29 = vld [vmem:[%s773_s1 + $0x58] sm:$0xff] }
   0x7   :  { %436 = vmatprep.mubr.msk.bf16.mxu0 %vm105_vm0, %v551_v11  ;;  %v618_v32 = vpack.c.bf16 %v30_v26, %v29_v25  ;;  %v626_v35 = vpack.c.bf16 %v615_v29, %v610_v28  ;;  %v31_v36 = vld [vmem:[%s774_s0 + $0x30] sm:$0xff]  ;;  %v32_v37 = vld [vmem:[%s774_s0 + $0x38] sm:$0xff]  ;;  %v87_v38 = vsub.f32 %v33_v0, %v75_v30  ;;  %v88_v39 = vsub.f32 %v34_v1, %v76_v31 }
   0x8   :  { %v63_v19 = vsub.f32 %v25_v8, %v55_v14  ;;  %v64_v20 = vsub.f32 %v26_v9, %v56_v15  ;;  %v57_v33 = vunpack.c.l.bf16 %v591_v24  ;;  %v58_v34 = vunpack.c.h.bf16 %v591_v24 }
   0x9   :  { %407 = vmatpush3.bf16.msra.mxu1 %v527_v5  ;;  %427 = vmatpush3.bf16.msra.mxu0 %v527_v5  ;;  %v59_v42 = vunpack.c.l.bf16 %v618_v32  ;;  %v60_v43 = vunpack.c.h.bf16 %v618_v32  ;;  %v640_v46 = vpack.c.bf16 %v32_v37, %v31_v36  ;;  %v80_v48 = vunpack.c.h.bf16 %v549_v10 }
   0xa   :  { %408 = vmatprep.subr.bf16.mxu1 %v549_v10  ;;  %428 = vmatprep.subr.bf16.mxu0 %v549_v10  ;;  %v71_v23 = vpack.c.bf16 %v64_v20, %v63_v19  ;;  %v65_v44 = vsub.f32 %v27_v16, %v57_v33  ;;  %v66_v45 = vsub.f32 %v28_v17, %v58_v34  ;;  %v81_v60 = vunpack.c.l.bf16 %v579_v18 }
   0xb   :  { %v99_v49 = vpack.c.bf16 %v88_v39, %v87_v38  ;;  %v89_v50 = vsub.f32 %v518_v2, %v77_v40  ;;  %v90_v51 = vsub.f32 %v523_v4, %v78_v41  ;;  %v67_v52 = vsub.f32 %v29_v25, %v59_v42 }
   0xc   :  { %416 = vmatprep.mubr.msk.bf16.mxu1 %vm105_vm0, %v71_v23  ;;  %v68_v53 = vsub.f32 %v30_v26, %v60_v43  ;;  %v72_v54 = vpack.c.bf16 %v66_v45, %v65_v44  ;;  %v61_v55 = vunpack.c.l.bf16 %v640_v46  ;;  %v62_v56 = vunpack.c.h.bf16 %v640_v46 }
   0xd   :  { %409 = vmatpush3.bf16.msra.mxu1 %v549_v10  ;;  %429 = vmatpush3.bf16.msra.mxu0 %v549_v10  ;;  %v91_v57 = vsub.f32 %v532_v6, %v79_v47  ;;  %v92_v58 = vsub.f32 %v537_v7, %v80_v48  ;;  %v100_v59 = vpack.c.bf16 %v90_v51, %v89_v50  ;;  %v82_v61 = vunpack.c.h.bf16 %v579_v18 }
   0xe   :  { %410 = vmatprep.subr.bf16.mxu1 %v579_v18  ;;  %430 = vmatprep.subr.bf16.mxu0 %v579_v18  ;;  %v73_v62 = vpack.c.bf16 %v68_v53, %v67_v52  ;;  %v69_v63 = vsub.f32 %v31_v36, %v61_v55  ;;  %v70_v0 = vsub.f32 %v32_v37, %v62_v56  ;;  %v83_v4 = vunpack.c.l.bf16 %v605_v27 }
   0xf   :  { %v101_v1 = vpack.c.bf16 %v92_v58, %v91_v57  ;;  %v93_v2 = vsub.f32 %v556_v12, %v81_v60  ;;  %v94_v3 = vsub.f32 %v561_v13, %v82_v61  ;;  %v84_v5 = vunpack.c.h.bf16 %v605_v27 }
  0x10   :  { %v74_v6 = vpack.c.bf16 %v70_v0, %v69_v63  ;;  %v85_v7 = vunpack.c.l.bf16 %v626_v35  ;;  %v95_v9 = vsub.f32 %v584_v21, %v83_v4  ;;  %v86_v12 = vunpack.c.h.bf16 %v626_v35 }
  0x11   :  { %411 = vmatpush3.bf16.msra.mxu1 %v579_v18  ;;  %431 = vmatpush3.bf16.msra.mxu0 %v579_v18  ;;  %v102_v8 = vpack.c.bf16 %v94_v3, %v93_v2  ;;  %v96_v10 = vsub.f32 %v589_v22, %v84_v5 }
  0x12   :  { %412 = vmatprep.subr.bf16.mxu1 %v605_v27  ;;  %432 = vmatprep.subr.bf16.mxu0 %v605_v27  ;;  %v97_v14 = vsub.f32 %v610_v28, %v85_v7  ;;  %v98_v15 = vsub.f32 %v615_v29, %v86_v12 }
  0x13   :  { %v103_v13 = vpack.c.bf16 %v96_v10, %v95_v9 }
  0x14   :  { %v104_v16 = vpack.c.bf16 %v98_v15, %v97_v14 }
  0x15   :  { %413 = vmatpush3.bf16.msra.mxu1 %v605_v27  ;;  %433 = vmatpush3.bf16.msra.mxu0 %v605_v27 }
  0x16   :  { %414 = vmatprep.subr.bf16.mxu1 %v626_v35  ;;  %434 = vmatprep.subr.bf16.mxu0 %v626_v35 }
  0x19   :  { %415 = vmatpush3.bf16.msra.mxu1 %v626_v35  ;;  %435 = vmatpush3.bf16.msra.mxu0 %v626_v35 }
  0x1a   :  { %444 = vmatprep.subr.bf16.mxu0 %v99_v49  ;;  %464 = vmatprep.subr.bf16.mxu1 %v99_v49 }
  0x1c   :  { %417 = vmatmul.mubr.msk.bf16.vlgmr.msra.gmra.mrb[0].mxu1 %vm105_vm0, %v72_v54  ;;  %437 = vmatmul.mubr.msk.bf16.vlgmr.msra.gmra.mrb[0].mxu0 %vm105_vm0, %v591_v24 }
  0x1d   :  { %445 = vmatpush3.bf16.msra.mxu0 %v99_v49  ;;  %470 = vmatpush3.bf16.msra.mxu1 %v99_v49 }
  0x1e   :  { %446 = vmatprep.subr.bf16.mxu0 %v100_v59  ;;  %465 = vmatprep.subr.bf16.mxu1 %v100_v59 }
  0x1f   :  { %420 = vmatprep.mubr.msk.bf16.mxu1 %vm105_vm0, %v73_v62  ;;  %440 = vmatprep.mubr.msk.bf16.mxu0 %vm105_vm0, %v618_v32 }
  0x21   :  { %447 = vmatpush3.bf16.msra.mxu0 %v100_v59  ;;  %471 = vmatpush3.bf16.msra.mxu1 %v100_v59 }
  0x22   :  { %448 = vmatprep.subr.bf16.mxu0 %v101_v1  ;;  %466 = vmatprep.subr.bf16.mxu1 %v101_v1 }
  0x24   :  { %421 = vmatmul.mubr.msk.bf16.gmra.mrb[4].mxu1 %vm105_vm0, %v74_v6  ;;  %441 = vmatmul.mubr.msk.bf16.gmra.mrb[4].mxu0 %vm105_vm0, %v640_v46 }
  0x25   :  { %449 = vmatpush3.bf16.msra.mxu0 %v101_v1  ;;  %472 = vmatpush3.bf16.msra.mxu1 %v101_v1 }
  0x26   :  { %450 = vmatprep.subr.bf16.mxu0 %v102_v8  ;;  %467 = vmatprep.subr.bf16.mxu1 %v102_v8 }
  0x27   :  { %456 = vmatprep.mubr.msk.bf16.mxu0 %vm105_vm0, %v551_v11  ;;  %460 = vmatprep.mubr.msk.bf16.mxu1 %vm105_vm0, %v618_v32  ;;  %v493_v11 = vmov 0.0  }
  0x28   :  { %19 = vst.msk [vmem:[%s775_s2 + $0x10] sm:$0xff] %vm16_vm1, %v493_v11  ;;  %17 = vst.msk [vmem:[%s775_s2] sm:$0xff] %vm16_vm1, %v493_v11 }
  0x29   :  { %451 = vmatpush3.bf16.msra.mxu0 %v102_v8  ;;  %473 = vmatpush3.bf16.msra.mxu1 %v102_v8  ;;  %18 = vst.msk [vmem:[%s775_s2 + $0x8] sm:$0xff] %vm16_vm1, %v493_v11  ;;  %20 = vst.msk [vmem:[%s775_s2 + $0x18] sm:$0xff] %vm16_vm1, %v493_v11 }
  0x2a   :  { %452 = vmatprep.subr.bf16.mxu0 %v103_v13  ;;  %468 = vmatprep.subr.bf16.mxu1 %v103_v13  ;;  %21 = vst.msk [vmem:[%s775_s2 + $0x20] sm:$0xff] %vm16_vm1, %v493_v11  ;;  %22 = vst.msk [vmem:[%s775_s2 + $0x28] sm:$0xff] %vm16_vm1, %v493_v11 }
  0x2b   :  { %23 = vst.msk [vmem:[%s775_s2 + $0x30] sm:$0xff] %vm16_vm1, %v493_v11  ;;  %24 = vst.msk [vmem:[%s775_s2 + $0x38] sm:$0xff] %vm16_vm1, %v493_v11 }
  0x2d   :  { %453 = vmatpush3.bf16.msra.mxu0 %v103_v13  ;;  %474 = vmatpush3.bf16.msra.mxu1 %v103_v13 }
  0x2e   :  { %454 = vmatprep.subr.bf16.mxu0 %v104_v16  ;;  %469 = vmatprep.subr.bf16.mxu1 %v104_v16 }
  0x2f   :  { %v335_v34 = vld [vmem:[%s775_s2 + $0x10] sm:$0xff]  ;;  %v333_v40 = vld [vmem:[%s775_s2] sm:$0xff] }
  0x30   :  { %v334_v54 = vld [vmem:[%s775_s2 + $0x8] sm:$0xff] }
  0x31   :  { %455 = vmatpush3.bf16.msra.mxu0 %v104_v16  ;;  %475 = vmatpush3.bf16.msra.mxu1 %v104_v16  ;;  %v337_v42 = vld [vmem:[%s775_s2 + $0x20] sm:$0xff]  ;;  %v338_v56 = vld [vmem:[%s775_s2 + $0x28] sm:$0xff] }
  0x32   :  { %v339_v36 = vld [vmem:[%s775_s2 + $0x30] sm:$0xff]  ;;  %v340_v48 = vld [vmem:[%s775_s2 + $0x38] sm:$0xff] }
  0x34   :  { %457 = vmatmul.mubr.msk.bf16.vlgmr.msra.gmra.mrb[0].mxu0 %vm105_vm0, %v591_v24  ;;  %461 = vmatmul.mubr.msk.bf16.vlgmr.msra.gmra.mrb[8].mxu1 %vm105_vm0, %v640_v46  ;;  %v336_v46 = vld [vmem:[%s775_s2 + $0x18] sm:$0xff] }
  0xef   :  { %v418_v17 = vpop.f32.mrb[0].mxu1 }
  0xf0   :  { %v152_v18 = vpop.f32.mrb[1].mxu1 }
  0xf1   :  { %v419_v19 = vpop.f32.mrb[2].mxu1 }
  0xf2   :  { %v155_v20 = vpop.f32.mrb[3].mxu1 }
  0xf7   :  { %v422_v21 = vpop.f32.mrb[4].mxu1  ;;  %v442_v22 = vpop.f32.mrb[4].mxu0 }
  0xf8   :  { %v254_v23 = vadd.f32 %v442_v22, %v422_v21  ;;  %v168_v24 = vpop.f32.mrb[5].mxu1  ;;  %v245_v25 = vpop.f32.mrb[5].mxu0 }
  0xf9   :  { %v246_v26 = vadd.f32 %v245_v25, %v168_v24  ;;  %v423_v27 = vpop.f32.mrb[6].mxu1  ;;  %v443_v28 = vpop.f32.mrb[6].mxu0 }
  0xfa   :  { %v257_v29 = vadd.f32 %v443_v28, %v423_v27  ;;  %v171_v30 = vpop.f32.mrb[7].mxu1  ;;  %v248_v31 = vpop.f32.mrb[7].mxu0 }
  0xfb   :  { %v249_v32 = vadd.f32 %v248_v31, %v171_v30 }
 0x107   :  { %v458_v33 = vpop.f32.mrb[0].mxu0  ;;  %v462_v35 = vpop.f32.mrb[8].mxu1 }
 0x108   :  { %v476_v37 = vadd.f32 %v458_v33, %v418_v17  ;;  %v331_v38 = vadd.f32 %v462_v35, %v254_v23  ;;  %v294_v39 = vpop.f32.mrb[1].mxu0  ;;  %v310_v41 = vpop.f32.mrb[9].mxu1 }
 0x109   :  { %v477_v43 = vadd.f32 %v294_v39, %v152_v18  ;;  %v329_v44 = vadd.f32 %v310_v41, %v246_v26  ;;  %v459_v45 = vpop.f32.mrb[2].mxu0  ;;  %v463_v47 = vpop.f32.mrb[10].mxu1 }
 0x10a   :  { %v343_v49 = vadd.f32 %v476_v37, %v335_v34  ;;  %v347_v50 = vadd.f32 %v339_v36, %v331_v38  ;;  %v478_v51 = vadd.f32 %v459_v45, %v419_v19  ;;  %v332_v52 = vadd.f32 %v463_v47, %v257_v29  ;;  %v297_v53 = vpop.f32.mrb[3].mxu0  ;;  %v313_v55 = vpop.f32.mrb[11].mxu1 }
 0x10b   :  { %v341_v57 = vadd.f32 %v477_v43, %v333_v40  ;;  %v345_v58 = vadd.f32 %v337_v42, %v329_v44  ;;  %v479_v59 = vadd.f32 %v297_v53, %v155_v20  ;;  %v330_v60 = vadd.f32 %v313_v55, %v249_v32 }
 0x10c   :  { %352 = vst.msk [vmem:[%s775_s2 + $0x10] sm:$0xff] %vm16_vm1, %v343_v49  ;;  %356 = vst.msk [vmem:[%s775_s2 + $0x30] sm:$0xff] %vm16_vm1, %v347_v50  ;;  %v344_v61 = vadd.f32 %v478_v51, %v336_v46  ;;  %v348_v62 = vadd.f32 %v340_v48, %v332_v52 }
 0x10d   :  { %350 = vst.msk [vmem:[%s775_s2] sm:$0xff] %vm16_vm1, %v341_v57  ;;  %354 = vst.msk [vmem:[%s775_s2 + $0x20] sm:$0xff] %vm16_vm1, %v345_v58  ;;  %v342_v63 = vadd.f32 %v479_v59, %v334_v54  ;;  %v346_v0 = vadd.f32 %v338_v56, %v330_v60 }
 0x10e   :  { %353 = vst.msk [vmem:[%s775_s2 + $0x18] sm:$0xff] %vm16_vm1, %v344_v61  ;;  %357 = vst.msk [vmem:[%s775_s2 + $0x38] sm:$0xff] %vm16_vm1, %v348_v62 }
 0x10f   :  { %351 = vst.msk [vmem:[%s775_s2 + $0x8] sm:$0xff] %vm16_vm1, %v342_v63  ;;  %355 = vst.msk [vmem:[%s775_s2 + $0x28] sm:$0xff] %vm16_vm1, %v346_v0 }

</bundles_post_ra>
